<compile_context>
chip_gen: v6e
topology: v6e:2x2x1
jax: 0.10.0
libtpu: 0.0.40
codegen_flags: <defaults>
</compile_context>

<pallas_src>
import functools

import jax
import jax.numpy as jnp
from jax.experimental import pallas as pl
from jax.experimental.pallas import tpu as pltpu


def _partial_loss_kernel(idx_ref, out_ref, conf_ref, wm_ref, part_ref, acc_ref,
                         *, seq_len):
    """Grid = (B, num_s_tiles).

    Accumulates per-row  weights*mask * sum_c(log_softmax(outputs)*conf)  into
    a (tile_s, 1) vector accumulator and writes one partial numerator per
    example on the last reduction step.
    """
    del idx_ref  # only consumed by the BlockSpec index_maps
    si = pl.program_id(1)

    @pl.when(si == 0)
    def _():
        acc_ref[...] = jnp.zeros_like(acc_ref)

    x = out_ref[0].astype(jnp.float32)           # (tile_s, C) logits
    c = conf_ref[0].astype(jnp.float32)          # (tile_s, C) soft labels
    w = wm_ref[0]                                # (tile_s, 1) weights*pad_mask

    # Numerically stable log_softmax over the class (lane) axis.
    x_max = jnp.max(x, axis=-1, keepdims=True)
    shifted = x - x_max
    lse = jnp.log(jnp.sum(jnp.exp(shifted), axis=-1, keepdims=True))
    logsm = shifted - lse

    per_row = jnp.sum(logsm * c, axis=-1, keepdims=True)        # (tile_s, 1)

    # Mask the ragged tail: rows >= S in a partial edge block hold undefined
    # data; jnp.where (select) keeps any NaN/Inf from leaking in.
    tile_s = x.shape[0]
    row_idx = si * tile_s + jax.lax.broadcasted_iota(jnp.int32, (tile_s, 1), 0)
    contrib = jnp.where(row_idx < seq_len, per_row * w, 0.0)

    acc_ref[...] += contrib

    @pl.when(si == pl.num_programs(1) - 1)
    def _():
        part_ref[...] = jnp.sum(acc_ref[...]).reshape(1, 1, 1)


def partial_loss_forward(outputs, index, pad_mask, weights, confidence,
                         *, row_tile=512):
    """outputs: (B,S,C), index: (B,) int, pad_mask: (B,S) bool,
    weights: (B,S), confidence: (N,Smax,C)  ->  scalar f32 loss."""
    B, S, C = outputs.shape
    N, Smax, Cc = confidence.shape
    assert Cc == C and S <= Smax

    index = index.astype(jnp.int32)
    wm = (weights.astype(jnp.float32)
          * pad_mask.astype(jnp.float32))[..., None]            # (B, S, 1)

    o_is = jnp.dtype(outputs.dtype).itemsize
    c_is = jnp.dtype(confidence.dtype).itemsize

    # Tile choice: big tiles amortize the ~0.35us/step overhead; cap so the
    # double-buffered (outputs + confidence) working set stays <= ~40 MiB
    # (v7x has 64 MiB physical VMEM; v5e/v6e have 128 MiB).
    row_tile = max(8, (int(row_tile) // 8) * 8)
    rows_budget = max(8, ((40 << 20) // (2 * C * (o_is + c_is))) // 8 * 8)
    row_tile = min(row_tile, rows_budget)

    if S >= 8:
        # Fused-gather path: confidence rows are picked in-kernel through the
        # scalar-prefetched `index`.
        tile_s = min(row_tile, (S // 8) * 8)
        conf_arg = confidence
        conf_spec = pl.BlockSpec((1, tile_s, C),
                                 lambda b, si, idx: (idx[b], si, 0))
    else:
        # Tiny ragged S: wrapper-side gather so every block equals full array
        # dims (keeps the (8,128) layout rules satisfied). Negligible cost.
        tile_s = S
        conf_arg = confidence[index, :S]                        # (B, S, C)
        conf_spec = pl.BlockSpec((1, tile_s, C),
                                 lambda b, si, idx: (b, si, 0))

    num_s = pl.cdiv(S, tile_s)

    vmem_usage = (2 * tile_s * C * (o_is + c_is)   # double-buffered streams
                  + 2 * tile_s * 4                 # wm, double-buffered
                  + tile_s * 4 + 1024)             # accumulator + slack
    vmem_limit = int(min(max(vmem_usage + (8 << 20), 16 << 20), 48 << 20))

    kernel = functools.partial(_partial_loss_kernel, seq_len=S)

    partials = pl.pallas_call(
        kernel,
        out_shape=jax.ShapeDtypeStruct((B, 1, 1), jnp.float32),
        grid_spec=pltpu.PrefetchScalarGridSpec(
            num_scalar_prefetch=1,
            grid=(B, num_s),
            in_specs=[
                pl.BlockSpec((1, tile_s, C), lambda b, si, idx: (b, si, 0)),
                conf_spec,
                pl.BlockSpec((1, tile_s, 1), lambda b, si, idx: (b, si, 0)),
            ],
            out_specs=pl.BlockSpec((1, 1, 1), lambda b, si, idx: (b, 0, 0)),
            scratch_shapes=[pltpu.VMEM((tile_s, 1), jnp.float32)],
        ),
        compiler_params=pltpu.CompilerParams(
            dimension_semantics=("parallel", "arbitrary"),
            vmem_limit_bytes=vmem_limit),
    )(index, outputs, conf_arg, wm)

    num = jnp.sum(partials)
    den = jnp.sum(pad_mask.astype(jnp.float32))
    # den == 0 (no selected spans) yields NaN, matching the reference
    # mean-of-empty-selection behaviour.
    return -num / den


# TODO(synk): postprocess_pseudo=True branch depends on the external
# get_pruning_predIdxs (span pruning on host lists); not translated.
def partial_loss_reference(outputs, index, pad_mask, weights, confidence):
    """Plain-JAX mirror of the PyTorch forward (postprocess_pseudo=False)."""
    conf = confidence[index, :outputs.shape[1]]
    sel_out = outputs[pad_mask]                                 # (Nsel, C)
    sel_conf = conf[pad_mask]
    sel_w = weights[pad_mask]
    logsm = jax.nn.log_softmax(sel_out.astype(jnp.float32), axis=1)
    final = logsm * sel_conf.astype(jnp.float32)
    return -(final.sum(axis=1) * sel_w.astype(jnp.float32)).mean()


if __name__ == "__main__":
    key = jax.random.PRNGKey(0)
    k_out, k_conf, k_w = jax.random.split(key, 3)

    # Small shapes implied by the module: B examples, S spans, C classes,
    # a confidence table over N total training examples.
    B, S, C, N, Smax = 2, 8, 32, 10, 8

    outputs = jax.random.normal(k_out, (B, S, C), dtype=jnp.float32)
    # confidence rows are (soft) label distributions over C classes.
    confidence = jax.nn.softmax(
        jax.random.normal(k_conf, (N, Smax, C), dtype=jnp.float32), axis=-1)
    index = jnp.array([3, 7], dtype=jnp.int32)
    weights = jax.random.uniform(k_w, (B, S), dtype=jnp.float32) + 0.5
    pad_mask = jnp.array(
        [[True] * 6 + [False] * 2,
         [True] * 5 + [False] * 3], dtype=bool)

    loss = partial_loss_forward(outputs, index, pad_mask, weights, confidence)
    loss = jax.block_until_ready(loss)

    ref = partial_loss_reference(outputs, index, pad_mask, weights, confidence)
    assert jnp.allclose(loss, ref, rtol=1e-5, atol=1e-5), (loss, ref)

    print("KERNEL_OK")
</pallas_src>

<mosaic_0001>
module attributes {stable_mosaic.version = 11 : i64} {
  func.func @_partial_loss_kernel(%arg0: i32, %arg1: i32, %arg2: memref<2xi32, #tpu.memory_space<smem>>, %arg3: memref<1x8x32xf32, #tpu.memory_space<vmem>>, %arg4: memref<1x8x32xf32, #tpu.memory_space<vmem>>, %arg5: memref<1x8x1xf32, #tpu.memory_space<vmem>>, %arg6: memref<1x1x1xf32, #tpu.memory_space<vmem>>, %arg7: memref<8x1xf32, #tpu.memory_space<vmem>>) attributes {dimension_semantics = [#tpu.dimension_semantics<parallel>, #tpu.dimension_semantics<arbitrary>], iteration_bounds = array<i64: 2, 1>, scalar_prefetch = 1 : i64, scratch_operands = 1 : i64, tpu.core_type = #tpu.core_type<tc>, window_params = [{transform_indices = @transform_0, window_bounds = array<i64: 1, 8, 32>}, {transform_indices = @transform_1, window_bounds = array<i64: 1, 8, 32>}, {transform_indices = @transform_2, window_bounds = array<i64: 1, 8, 1>}, {transform_indices = @transform_3, window_bounds = array<i64: 1, 1, 1>}]} {
    %c0_i32 = arith.constant 0 : i32
    %0 = arith.cmpi eq, %arg1, %c0_i32 : i32
    %1 = arith.extui %0 : i1 to i32
    %c0_i32_0 = arith.constant 0 : i32
    %2 = arith.cmpi ne, %1, %c0_i32_0 : i32
    scf.if %2 {
      %cst_19 = arith.constant 0.000000e+00 : f32
      %37 = vector.broadcast %cst_19 : f32 to vector<8x1xf32>
      %c0_20 = arith.constant 0 : index
      %c0_21 = arith.constant 0 : index
      %38 = vector.load %arg7[%c0_20, %c0_21] : memref<8x1xf32, #tpu.memory_space<vmem>>, vector<8x1xf32>
      tpu.vector_store %arg7[%c0_20, %c0_21], %37 {strides = array<i32>} : memref<8x1xf32, #tpu.memory_space<vmem>>, vector<8x1xf32>,
    } else {
    }
    %c0 = arith.constant 0 : index
    %c0_1 = arith.constant 0 : index
    %c0_2 = arith.constant 0 : index
    %3 = vector.load %arg3[%c0, %c0_1, %c0_2] : memref<1x8x32xf32, #tpu.memory_space<vmem>>, vector<1x8x32xf32>
    %4 = vector.shape_cast %3 : vector<1x8x32xf32> to vector<8x32xf32>
    %c0_3 = arith.constant 0 : index
    %c0_4 = arith.constant 0 : index
    %c0_5 = arith.constant 0 : index
    %5 = vector.load %arg4[%c0_3, %c0_4, %c0_5] : memref<1x8x32xf32, #tpu.memory_space<vmem>>, vector<1x8x32xf32>
    %6 = vector.shape_cast %5 : vector<1x8x32xf32> to vector<8x32xf32>
    %c0_6 = arith.constant 0 : index
    %c0_7 = arith.constant 0 : index
    %c0_8 = arith.constant 0 : index
    %7 = vector.load %arg5[%c0_6, %c0_7, %c0_8] : memref<1x8x1xf32, #tpu.memory_space<vmem>>, vector<1x8x1xf32>
    %8 = vector.shape_cast %7 : vector<1x8x1xf32> to vector<8x1xf32>
    %cst = arith.constant dense<0xFF800000> : vector<8xf32>
    %9 = vector.multi_reduction <maximumf>, %4, %cst [1] : vector<8x32xf32> to vector<8xf32>
    %10 = vector.shape_cast %9 : vector<8xf32> to vector<8x1xf32>
    %11 = vector.broadcast %10 : vector<8x1xf32> to vector<8x32xf32>
    %12 = arith.subf %4, %11 : vector<8x32xf32>
    %13 = math.exp %12 : vector<8x32xf32>
    %cst_9 = arith.constant dense<0.000000e+00> : vector<8xf32>
    %14 = vector.multi_reduction <add>, %13, %cst_9 [1] : vector<8x32xf32> to vector<8xf32>
    %15 = vector.shape_cast %14 : vector<8xf32> to vector<8x1xf32>
    %16 = math.log %15 : vector<8x1xf32>
    %17 = vector.broadcast %16 : vector<8x1xf32> to vector<8x32xf32>
    %18 = arith.subf %12, %17 : vector<8x32xf32>
    %19 = arith.mulf %18, %6 : vector<8x32xf32>
    %cst_10 = arith.constant dense<0.000000e+00> : vector<8xf32>
    %20 = vector.multi_reduction <add>, %19, %cst_10 [1] : vector<8x32xf32> to vector<8xf32>
    %21 = vector.shape_cast %20 : vector<8xf32> to vector<8x1xf32>
    %c8_i32 = arith.constant 8 : i32
    %22 = arith.muli %arg1, %c8_i32 : i32
    %23 = tpu.iota {dimensions = array<i32: 0>} : vector<8x1xi32>
    %24 = vector.broadcast %22 : i32 to vector<8x1xi32>
    %25 = arith.addi %24, %23 : vector<8x1xi32>
    %c8_i32_11 = arith.constant 8 : i32
    %26 = vector.broadcast %c8_i32_11 : i32 to vector<8x1xi32>
    %27 = arith.cmpi slt, %25, %26 : vector<8x1xi32>
    %28 = arith.mulf %21, %8 : vector<8x1xf32>
    %cst_12 = arith.constant 0.000000e+00 : f32
    %29 = vector.broadcast %cst_12 : f32 to vector<8x1xf32>
    %30 = arith.select %27, %28, %29 : vector<8x1xi1>, vector<8x1xf32>
    %c0_13 = arith.constant 0 : index
    %c0_14 = arith.constant 0 : index
    %31 = vector.load %arg7[%c0_13, %c0_14] : memref<8x1xf32, #tpu.memory_space<vmem>>, vector<8x1xf32>
    %32 = arith.addf %31, %30 : vector<8x1xf32>
    %c0_15 = arith.constant 0 : index
    %c0_16 = arith.constant 0 : index
    %33 = vector.load %arg7[%c0_15, %c0_16] : memref<8x1xf32, #tpu.memory_space<vmem>>, vector<8x1xf32>
    tpu.vector_store %arg7[%c0_15, %c0_16], %32 {strides = array<i32>} : memref<8x1xf32, #tpu.memory_space<vmem>>, vector<8x1xf32>,
    %c0_i32_17 = arith.constant 0 : i32
    %34 = arith.cmpi eq, %arg1, %c0_i32_17 : i32
    %35 = arith.extui %34 : i1 to i32
    %c0_i32_18 = arith.constant 0 : i32
    %36 = arith.cmpi ne, %35, %c0_i32_18 : i32
    scf.if %36 {
      %c0_19 = arith.constant 0 : index
      %c0_20 = arith.constant 0 : index
      %37 = vector.load %arg7[%c0_19, %c0_20] : memref<8x1xf32, #tpu.memory_space<vmem>>, vector<8x1xf32>
      %38 = vector.shape_cast %37 : vector<8x1xf32> to vector<1x8x1xf32>
      %cst_21 = arith.constant dense<0.000000e+00> : vector<1xf32>
      %39 = vector.multi_reduction <add>, %38, %cst_21 [1, 2] : vector<1x8x1xf32> to vector<1xf32>
      %40 = vector.shape_cast %39 : vector<1xf32> to vector<1x1x1xf32>
      %41 = vector.extract %40[0, 0, 0] : f32 from vector<1x1x1xf32>
      %42 = vector.broadcast %41 : f32 to vector<1x1x1xf32>
      %c0_22 = arith.constant 0 : index
      %c0_23 = arith.constant 0 : index
      %c0_24 = arith.constant 0 : index
      %43 = vector.load %arg6[%c0_22, %c0_23, %c0_24] : memref<1x1x1xf32, #tpu.memory_space<vmem>>, vector<1x1x1xf32>
      tpu.vector_store %arg6[%c0_22, %c0_23, %c0_24], %42 {strides = array<i32>} : memref<1x1x1xf32, #tpu.memory_space<vmem>>, vector<1x1x1xf32>,
    } else {
    }
    return
  }
  func.func @transform_0(%arg0: i32, %arg1: i32, %arg2: memref<2xi32, #tpu.memory_space<smem>>) -> (i32, i32, i32) {
    %c0_i32 = arith.constant 0 : i32
    %c0_i32_0 = arith.constant 0 : i32
    return %arg0, %arg1, %c0_i32 : i32, i32, i32
  }
  func.func @transform_1(%arg0: i32, %arg1: i32, %arg2: memref<2xi32, #tpu.memory_space<smem>>) -> (i32, i32, i32) {
    %0 = arith.index_cast %arg0 : i32 to index
    %1 = memref.load %arg2[%0] : memref<2xi32, #tpu.memory_space<smem>>
    %c0_i32 = arith.constant 0 : i32
    %c0_i32_0 = arith.constant 0 : i32
    return %1, %arg1, %c0_i32 : i32, i32, i32
  }
  func.func @transform_2(%arg0: i32, %arg1: i32, %arg2: memref<2xi32, #tpu.memory_space<smem>>) -> (i32, i32, i32) {
    %c0_i32 = arith.constant 0 : i32
    %c0_i32_0 = arith.constant 0 : i32
    return %arg0, %arg1, %c0_i32 : i32, i32, i32
  }
  func.func @transform_3(%arg0: i32, %arg1: i32, %arg2: memref<2xi32, #tpu.memory_space<smem>>) -> (i32, i32, i32) {
    %c0_i32 = arith.constant 0 : i32
    %c0_i32_0 = arith.constant 0 : i32
    %c0_i32_1 = arith.constant 0 : i32
    return %arg0, %c0_i32, %c0_i32_0 : i32, i32, i32
  }
}

</mosaic_0001>

<bundles_post_ra>
// kernel: tpu_custom_call.1
= control target key start
LH: loop header
LB: loop body
LE: loop exit
PB: predicated region body
PF: predicated region fallthrough
CT: control target
= control target key end

     0   :  { %s747_s0 = inlined_call_operand.vmem [shape: s32[2], index: 0, kind: input, shape index: {}]   ;;  %s748_s1 = inlined_call_operand.vmem [shape: f32[2,8,32], index: 1, kind: input, shape index: {}]   ;;  %s749_s2 = inlined_call_operand.hbm [shape: f32[10,8,32], index: 2, kind: input, shape index: {}]   ;;  %s750_s3 = inlined_call_operand.vmem [shape: f32[2,8,1], index: 3, kind: input, shape index: {}]   ;;  %s751_s4 = inlined_call_operand.vmem [shape: f32[2,1,1], index: 4, kind: output, shape index: {}]  }
   0x1   :  { %s9_s17 = sshll.u32 %s747_s0, 4  ;;  %s10_s17 = int_to_ptr.vmem [resolvable:$true] %s9_s17 }
   0x2   :  { %s498_s18 = scalar_lea.vmem %s10_s17, 16  ;;  %p503_p1 = scmp.lt.s32.totalorder %s10_s17, %s10_s17 }
   0x3   :  { %p499_p0 = scmp.ne.s32.totalorder %s10_s17, %s498_s18  ;;  %p504_p2 = scmp.lt.s32.totalorder %s498_s18, %s498_s18 }
   0x5   :  { %p505_p3 = por %p504_p2, %p503_p1 }
   0x7   :  { %p506_p4 = pnand %p505_p3, %p499_p0 }
   0x9   :  { %509 = shalt.err (!%p506_p4)  }
   0xa   :  { %s592_s19 = smov [#allocation4]  }
   0xb   :  { %12 = dma.vmem_to_smem %s10_s17, 16, %s592_s19, [#allocation3] }
   0xc   :  { %562 = dma.done.wait [#allocation3], 16 }
   0xd   :  { %563 = vsyncadd [#allocation3], 4294967280 }
   0xe   :  { %14 = sfence }
   0xf   :  { %15 = vsyncpa [#allocation6], 0 }
  0x10   :  { %17 = vsyncpa [#allocation6 + $0x1], 0  ;;  %s623_s20 = smov 0   ;;  %s625_s21 = smov 0  }
  0x11   :  { %s627_s0 = smov 0   ;;  %s629_s22 = smov 0  }
  0x12   :  { %s631_s23 = smov 0   ;;  %s633_s24 = smov 0  }
  0x13 LB: > { %s35_s25 = sadd.s32 1, %s586_s23  ;;  %s419_s26 = sadd.s32 4294967295, %s590_s24   ;;  %s590_s24 = sphi %s633_s24, %s23_s24   ;;  %s586_s23 = sphi %s631_s23, %s762_s23   ;;  %s582_s22 = sphi %s629_s22, %s761_s22   ;;  %s578_s0 = sphi %s627_s0, %s760_s0   ;;  %s574_s21 = sphi %s625_s21, %s759_s21   ;;  %s570_s20 = sphi %s623_s20, %s758_s20  }
  0x14   : > { %p37_p5 = scmp.ge.s32.totalorder %s35_s25, 2  ;;  %s67_s27 = sld [smem:[#allocation4 + %s586_s23]] }
  0x15   : > { %p81_p6 = scmp.ne.s32.totalorder %s578_s0, %s574_s21  ;;  %p82_p7 = scmp.eq.s32.totalorder %s590_s24, 0 }
  0x16   : > { %s764_s25 = smov (%p37_p5, %s35_s25), 0  ;;  %p87_p8 = scmp.ne.s32.totalorder %s574_s21, %s570_s20 }
  0x17   : > { %s68_s28 = sld [smem:[#allocation4 + %s764_s25]]  ;;  %p88_p9 = scmp.eq.s32.totalorder %s419_s26, 0 }
  0x18   : > { %s74_s30 = sadd.s32 1, %s578_s0  ;;  %s175_s5 = sand.u32 1, %s578_s0  }
  0x19   : > { %p661_p10 = por %p88_p9, %p87_p8  ;;  %p83_p11 = por %p82_p7, %p81_p6 }
  0x1a   : > { %s423_s6 = sshll.u32 %s175_s5, 3  ;;  %p443_p12 = scmp.lt.s32.totalorder %s590_s24, 2 }
  0x1b   : > { %s753_s29 = scalar_select %p661_p10, 1, 0 }
  0x1c   : > { %p425_p13 = scmp.ge.s32.totalorder %s590_s24, 1  ;;  %p669_p1 = pnand %p443_p12, %p83_p11 }
  0x1d   : > { %s69_s7 = ssub.s32 %s67_s27, %s68_s28  ;;  %p203_p2 = scmp.lt.s32.totalorder %s590_s24, 3 }
  0x1e   : > { %p72_p0 = scmp.eq.s32.totalorder %s69_s7, 0  ;;  %s179_s14 = scalar_lea.vmem [#allocation5], %s423_s6 }
  0x1f   : > { %s433_s9 = scalar_select %p83_p11, [#allocation4], [#allocation7] }
  0x20   : > { %s674_s10 = scalar_select %p72_p0, %s578_s0, %s74_s30  }
  0x21   : > { %s434_s11 = scalar_select %p83_p11, %s586_s23, 0 }
  0x22   : > { %s766_s9 = smov (!%p443_p12, %s433_s9), [#allocation8]  ;;  %p678_p3 = pnand %p425_p13, %p203_p2 }
  0x23   : > { %s768_s11 = smov (!%p443_p12, %s434_s11), 0  ;;  %s188_s15 = sshll.u32 %s179_s14, 4  ;;  %s682_s15 = int_to_ptr.vmem [resolvable:$true] %s188_s15 }
  0x24   : > { %s180_s12 = sld [smem:[%s766_s9 + %s768_s11]]  ;;  %s176_s20 = scalar_lea.sflag [#allocation6], %s175_s5 }
  0x25   : > { %s755_s13 = scalar_select %p678_p3, 1, 0 }
  0x26   : > { %p512_p5 = pneg %p669_p1  ;;  %s515_s30 = scalar_lea.hbm %s749_s2, 1280 }
  0x2a   : > { %s424_s16 = sshll.u32 %s180_s12, 7 }
  0x2b   : > { %s186_s19 = scalar_lea.hbm %s749_s2, %s424_s16 }
  0x2c   : > { %s510_s26 = scalar_lea.hbm %s186_s19, 128  ;;  %p516_p8 = scmp.lt.s32.totalorder %s186_s19, %s749_s2 }
  0x2d   : > { %p511_p4 = scmp.ne.s32.totalorder %s186_s19, %s510_s26  ;;  %p517_p9 = scmp.lt.s32.totalorder %s515_s30, %s510_s26 }
  0x2f   : > { %p513_p6 = pnand %p512_p5, %p511_p4  ;;  %p518_p11 = por %p517_p9, %p516_p8 }
  0x31   : > { %p514_p7 = pneg %p513_p6 }
  0x33   : > { %p519_p12 = pnand %p518_p11, %p514_p7 }
  0x35   : > { %522 = shalt.err (!%p519_p12)
}
  0x36   : > { %s523_s5 = scalar_lea.vmem %s682_s15, 128  ;;  %s593_s9 = smov [#allocation5]  }
  0x37   : > { %p524_p13 = scmp.ne.s32.totalorder %s682_s15, %s523_s5  ;;  %s528_s11 = sshll.u32 %s593_s9, 4  ;;  %s529_s11 = int_to_ptr.vmem [resolvable:$false] %s528_s11 }
  0x38   : > { %s530_s12 = scalar_lea.vmem %s529_s11, 256  ;;  %p531_p4 = scmp.lt.s32.totalorder %s682_s15, %s529_s11 }
  0x39   : > { %p526_p0 = pnand %p524_p13, %p512_p5  ;;  %p532_p6 = scmp.lt.s32.totalorder %s530_s12, %s523_s5 }
  0x3b   : > { %p527_p2 = pneg %p526_p0  ;;  %p533_p10 = por %p532_p6, %p531_p4 }
  0x3d   : > { %p534_p3 = pnand %p533_p10, %p527_p2 }
  0x3f   : > { %537 = shalt.err (!%p534_p3)
}
  0x40   : > { %442 = dma.hbm_to_vmem [thread:$0]  (!%p669_p1), %s186_s19, 128, %s682_s15, %s176_s20  }
  0x41   : > { %p756_p7 = scmp.ne.s32.totalorder %s755_s13, 0 }
  0x42   : > { %s209_s14 = sand.u32 (!%p756_p7), 1, %s574_s21   ;;  %p757_p5 = scmp.ne.s32.totalorder (!%p756_p7), %s753_s29, 0 }
  0x43   : > { %207 = sbr.rel (%p756_p7) target bundleno = 749 (0x2ed), region = 32  ;;  %s426_s16 = sshll.u32 (!%p756_p7), %s209_s14, 3 }
  0x44   : > { %s210_s17 = scalar_lea.sflag (!%p756_p7), [#allocation6], %s209_s14  ;;  %s213_s18 = scalar_lea.vmem (!%p756_p7), [#allocation5], %s426_s16 }
  0x48   : > { %565 = dma.done.wait (%p757_p5), %s210_s17, 128  }
  0x49   : > { %567 = vsyncadd (%p757_p5), %s210_s17, 4294967168  ;;  %p248_p10 = scmp.lt.s32.totalorder %s582_s22, 1  ;;  %vm275_vm0 = vcmask 261120   ;;  %vm270_vm1 = vcmask 7168   ;;  %v594_v7 = vmov 0.0   ;;  %v273_v11 = vld [vmem:[%s213_s18] sm:$0xff] }
  0x4a   : > { %271 = vst.msk [vmem:[#allocation2] sm:$0xff] %vm270_vm1, %v594_v7  ;;  %vm319_vm2 = vcmask 0  }
  0x4b   : > { %s770_s22 = smov (!%p248_p10, %s582_s22), 1 }
  0x4c   : > { %s427_s8 = sshll.u32 %s770_s22, 3  ;;  %s265_s30 = scalar_lea.vmem %s751_s4, %s770_s22 }
  0x4d   : > { %s254_s19 = scalar_lea.vmem %s748_s1, %s427_s8  ;;  %s262_s26 = scalar_lea.vmem %s750_s3, %s427_s8 }
  0x4e   : > { %v272_v0 = vld [vmem:[%s254_s19] sm:$0xff] }
  0x4f   : > { %v276_v1 = vsel %vm275_vm0, %v272_v0, -inf  ;;  %v274_v15 = vld [vmem:[%s262_s26] sm:$0xff] }
  0x50   : > { %277 = vmax.xlane.f32.xlu0 %v276_v1 }
  0x51   : > { %v300_v17 = vld [vmem:[#allocation2] sm:$0xff] }
  0xd9   : > { %v278_v2 = vpop.xlane.xlu0 %277 }
  0xda   : > { %v279_v3 = vsub.f32 %v272_v0, %v278_v2 }
  0xdc   : > { %v280_v4 = vmul.f32 1.442695, %v279_v3 }
  0xde   : > { %494 = vpow2.f32 %v280_v4 }
  0xeb   : > { %v495_v5 = vpop.eup %494 }
  0xec   : > { %v282_v6 = vsel %vm275_vm0, %v495_v5, 0.0 }
  0xed   : > { %283 = vadd.xlane.f32.xlu0 %v282_v6 }
 0x176   : > { %v284_v8 = vpop.xlane.xlu0 %283 }
 0x177   : > { %496 = vlog2.f32 %v284_v8 }
 0x184   : > { %v497_v9 = vpop.eup %496 }
 0x185   : > { %v286_v10 = vmul.f32 0.6931472, %v497_v9 }
 0x187   : > { %v287_v12 = vsub.f32 %v279_v3, %v286_v10 }
 0x189   : > { %v288_v13 = vmul.f32 %v287_v12, %v273_v11 }
 0x18b   : > { %v289_v14 = vsel %vm275_vm0, %v288_v13, 0.0 }
 0x18c   : > { %290 = vadd.xlane.f32.xlu1 %v289_v14 }
 0x215   : > { %v291_v16 = vpop.xlane.xlu1 %290 }
 0x216   : > { %v298_v18 = vmul.f32 %v291_v16, %v274_v15 }
 0x218   : > { %v301_v19 = vadd.f32 %v300_v17, %v298_v18 }
 0x21a   : > { %303 = vst.msk [vmem:[#allocation2] sm:$0xff] %vm270_vm1, %v301_v19 }
 0x221   : > { %v307_v20 = vld [vmem:[#allocation2] sm:$0xff] }
 0x222   : > { %v308_v21 = vsel %vm270_vm1, %v307_v20, 0.0 }
 0x223   : > { %309 = vadd.xlane.f32.xlu1 %v308_v21 }
 0x2ac   : > { %v310_v22 = vpop.xlane.xlu1 %309 }
 0x2ad   : > { %v311_v23 = vrot.slane %v310_v22, 4 }
 0x2af   : > { %v312_v24 = vadd.f32 %v311_v23, %v310_v22 }
 0x2b1   : > { %v313_v25 = vrot.slane %v312_v24, 2 }
 0x2b3   : > { %v314_v26 = vadd.f32 %v313_v25, %v312_v24 }
 0x2b5   : > { %v315_v27 = vrot.slane %v314_v26, 1 }
 0x2b7   : > { %v316_v28 = vadd.f32 %v315_v27, %v314_v26 }
 0x2b9   : > { %431 = vpush %v316_v28 }
 0x2ea   : > { %s432_s6 = spop %431 }
 0x2eb   : > { %v318_v29 = vstv %s432_s6 }
 0x2ec   : > { %320 = vst.msk [vmem:[%s265_s30] sm:$0x1] %vm319_vm2, %v318_v29 }
 0x2ed PF: > { %s23_s24 = sadd.s32 1, %s590_s24   ;;  %s758_s20 = smov %s574_s21 }
 0x2ee   : > { %p20_p1 = scmp.ge.s32.totalorder %s23_s24, 4   ;;  %s759_s21 = smov %s578_s0 }
 0x2ef   : > { %s760_s0 = smov %s674_s10  ;;  %s761_s22 = smov %s586_s23 }
 0x2f0   : > { %s762_s23 = smov %s764_s25  ;;  %22 = sbr.rel (!%p20_p1) target bundleno = 19 (0x13), region = 86 }
 0x2f5   :  { %338 = vsyncpa [#allocation6], 1 }
 0x2f6   :  { %340 = vsyncpa [#allocation6 + $0x1], 1 }

</bundles_post_ra>
